<compile_context>
chip_gen: v6e
topology: v6e:2x2x1
jax: 0.10.0
libtpu: 0.0.40
codegen_flags: <defaults>
</compile_context>

<pallas_src>
import math
from functools import partial

import jax
import jax.numpy as jnp
from jax.experimental import pallas as pl
from jax.experimental.pallas import tpu as pltpu


# ---------------------------------------------------------------------------
# Generation-aware configuration
# ---------------------------------------------------------------------------
def _vmem_limit_bytes():
    """Scoped-VMEM request sized per TPU generation (leave double-buffer headroom)."""
    try:
        cap = int(pltpu.get_tpu_info().vmem_capacity_bytes)
    except Exception:
        return 48 * 1024 * 1024                      # safe on v5e / v6e / v7x
    if cap >= 128 * 1024 * 1024:                     # v5e / v6e: 128 MiB physical
        return 100 * 1024 * 1024
    # v7x: 64 MiB per TensorCore -> stay near ~48 MiB so double-buffering survives
    return max(32 * 1024 * 1024, min(cap - 16 * 1024 * 1024, 100 * 1024 * 1024))


def _default_compute_dtype():
    """bf16 MXU path by default on v5e (bf16-native MXU), f32 elsewhere."""
    try:
        kind = jax.devices()[0].device_kind.lower()
    except Exception:
        return jnp.float32
    if "v5 lite" in kind or "v5e" in kind or "v5litepod" in kind:
        return jnp.bfloat16
    return jnp.float32


def _pick_tile(total, target, mult):
    """Largest multiple of `mult` <= target that divides `total`, else full dim."""
    if total <= target:
        return total
    best = None
    c = mult
    while c <= target:
        if total % c == 0:
            best = c
        c += mult
    return best if best is not None else total


# ---------------------------------------------------------------------------
# Tiled linear:  y = x @ w_t + b        (w_t is (in, out); K/N-tiled, f32 acc)
# ---------------------------------------------------------------------------
def _linear_kernel(x_ref, w_ref, b_ref, o_ref, acc_ref):
    k = pl.program_id(2)

    @pl.when(k == 0)
    def _init():
        acc_ref[...] = jnp.zeros_like(acc_ref)

    # cast x to the weight (compute) dtype in-kernel: avoids a separate host-side
    # cast pass over the activations.
    acc_ref[...] += jnp.dot(x_ref[...].astype(w_ref.dtype), w_ref[...],
                            preferred_element_type=jnp.float32)

    @pl.when(k == pl.num_programs(2) - 1)
    def _fin():
        o_ref[...] = (acc_ref[...] + b_ref[...].astype(jnp.float32)).astype(o_ref.dtype)


def _linear(x2d, w_t, b2d, out_dtype, *, row_target=256, col_target=512, k_target=512):
    rows, e_in = x2d.shape
    e_out = w_t.shape[1]
    tr = _pick_tile(rows, row_target, 8)
    tn = _pick_tile(e_out, col_target, 128)
    tk = _pick_tile(e_in, k_target, 128)
    return pl.pallas_call(
        _linear_kernel,
        out_shape=jax.ShapeDtypeStruct((rows, e_out), out_dtype),
        grid=(rows // tr, e_out // tn, e_in // tk),
        in_specs=[
            pl.BlockSpec((tr, tk), lambda r, n, k: (r, k)),
            pl.BlockSpec((tk, tn), lambda r, n, k: (k, n)),
            pl.BlockSpec((1, tn), lambda r, n, k: (0, n)),
        ],
        out_specs=pl.BlockSpec((tr, tn), lambda r, n, k: (r, n)),
        scratch_shapes=[pltpu.VMEM((tr, tn), jnp.float32)],
        compiler_params=pltpu.CompilerParams(
            dimension_semantics=("parallel", "parallel", "arbitrary"),
            vmem_limit_bytes=_vmem_limit_bytes()),
    )(x2d, w_t, b2d)


# ---------------------------------------------------------------------------
# Flash-style attention core with online softmax and fused head split / merge
# ---------------------------------------------------------------------------
def _attention_kernel(*refs, heads, head_dim, use_mask):
    if use_mask:
        q_ref, k_ref, v_ref, bias_ref, o_ref, qh_sc, m_sc, l_sc, acc_sc = refs
    else:
        q_ref, k_ref, v_ref, o_ref, qh_sc, m_sc, l_sc, acc_sc = refs
        bias_ref = None

    ki = pl.program_id(2)

    @pl.when(ki == 0)
    def _init():
        q = q_ref[...]
        q = q.reshape(q.shape[0], heads, head_dim)     # drop fused-QKV selector dim (free)
        qh_sc[...] = jnp.swapaxes(q, 0, 1)             # head-major Q tile, built once per (n, qi)
        m_sc[...] = jnp.full_like(m_sc, -jnp.inf)
        l_sc[...] = jnp.zeros_like(l_sc)
        acc_sc[...] = jnp.zeros_like(acc_sc)

    k = k_ref[...]
    v = v_ref[...]
    kh = jnp.swapaxes(k.reshape(k.shape[0], heads, head_dim), 0, 1)   # (H, tk, hd)
    vh = jnp.swapaxes(v.reshape(v.shape[0], heads, head_dim), 0, 1)   # (H, tk, hd)
    qh = qh_sc[...]                                                   # (H, tq, hd)

    # scores; the 1/sqrt(E) softmax scale is pre-folded into the Q projection weights
    s = jnp.einsum('hqd,hkd->hqk', qh, kh,
                   preferred_element_type=jnp.float32)                # (H, tq, tk)
    if use_mask:
        # additive bias (0 or ~-1e20), streamed as bf16; equivalent to masked_fill
        # for softmax (exp underflows to exactly 0 on masked entries).
        s = s + bias_ref[...].astype(jnp.float32)[None, :, :]

    # online softmax update (all statistics in f32)
    m_prev = m_sc[...]
    m_new = jnp.maximum(m_prev, jnp.max(s, axis=-1, keepdims=True))
    alpha = jnp.exp(m_prev - m_new)
    p = jnp.exp(s - m_new)
    l_sc[...] = alpha * l_sc[...] + jnp.sum(p, axis=-1, keepdims=True)
    acc_sc[...] = alpha * acc_sc[...] + jnp.einsum(
        'hqk,hkd->hqd', p.astype(vh.dtype), vh, preferred_element_type=jnp.float32)
    m_sc[...] = m_new

    @pl.when(ki == pl.num_programs(2) - 1)
    def _fin():
        ctx = acc_sc[...] * pl.reciprocal(l_sc[...], approx=False)    # (H, tq, hd)
        # fused head merge -> lane-dense (tq, E) store
        o_ref[...] = jnp.swapaxes(ctx, 0, 1).reshape(o_ref.shape).astype(o_ref.dtype)


# ---------------------------------------------------------------------------
# Host wrapper: equivalent of SelfAttention.forward(values, keys, queries, mask)
# ---------------------------------------------------------------------------
def self_attention(values, keys, queries, mask, params, heads, compute_dtype=None):
    if compute_dtype is None:
        compute_dtype = _default_compute_dtype()
    cd = compute_dtype

    N, Sq, E = queries.shape
    Sk = keys.shape[1]
    Sv = values.shape[1]
    hd = E // heads
    assert hd * heads == E, "embedding size not a multiple of heads"
    assert Sk == Sv, "key/value sequence lengths must match"

    (Wq, bq), (Wk, bk), (Wv, bv), (Wo, bo) = params
    scale = 1.0 / math.sqrt(E)            # module scales by 1/sqrt(embeddingSize)

    # fold the softmax scale into the query projection (zero runtime cost)
    wq_t = (jnp.asarray(Wq).T * scale).astype(cd)
    wk_t = jnp.asarray(Wk).T.astype(cd)
    wv_t = jnp.asarray(Wv).T.astype(cd)
    wo_t = jnp.asarray(Wo).T.astype(cd)
    bq2 = (jnp.asarray(bq) * scale).astype(jnp.float32).reshape(1, E)
    bk2 = jnp.asarray(bk).astype(jnp.float32).reshape(1, E)
    bv2 = jnp.asarray(bv).astype(jnp.float32).reshape(1, E)
    bo2 = jnp.asarray(bo).astype(jnp.float32).reshape(1, E)

    # fused QKV projection when this is true self-attention (same input tensor);
    # note: the `is` identity check only fires when the caller passes the same
    # Python object (as in self-attention use), not across jit boundaries.
    fused_qkv = (queries is keys) and (keys is values)
    if fused_qkv:
        w_qkv = jnp.concatenate([wq_t, wk_t, wv_t], axis=1)          # (E, 3E)
        b_qkv = jnp.concatenate([bq2, bk2, bv2], axis=1)             # (1, 3E)
        qkv = _linear(queries.reshape(N * Sq, E), w_qkv, b_qkv, cd)  # (rows, 3E)
        qkv5 = qkv.reshape(N, Sq, 3, heads, hd)                      # free reshape
    else:
        Qh = _linear(queries.reshape(N * Sq, E), wq_t, bq2, cd).reshape(N, Sq, heads, hd)
        Kh = _linear(keys.reshape(N * Sk, E), wk_t, bk2, cd).reshape(N, Sk, heads, hd)
        Vh = _linear(values.reshape(N * Sv, E), wv_t, bv2, cd).reshape(N, Sv, heads, hd)

    use_mask = mask is not None
    if use_mask:
        m = jnp.asarray(mask)
        # TODO(synk): only masks that broadcast over batch & heads are supported
        # (causal / shared padding); per-batch masks would need an (N, Sq, Sk)
        # bias plus a batch index in its BlockSpec. Fully-masked rows degenerate
        # differently from torch (softmax of raw scores instead of uniform).
        assert all(int(d) == 1 for d in m.shape[:-2]), "mask must broadcast over batch/heads"
        m2d = jnp.broadcast_to(m.reshape(m.shape[-2:]), (Sq, Sk))
        bias2d = jnp.where(m2d == 0, -1e20, 0.0).astype(jnp.bfloat16)  # additive, bf16 stream

    # tile sizes: tq target 256 (fills the 256-wide MXU on v6e/v7x), tk multiple
    # of 128/256 so the PV contraction fills the array; exact divisors only.
    tq = _pick_tile(Sq, 256, 8)
    tk = _pick_tile(Sk, 256, 128)
    grid = (N, Sq // tq, Sk // tk)        # batch & q-tiles parallel (v7x dual-TC),
                                          # key reduction innermost + arbitrary

    if fused_qkv:
        q_spec = pl.BlockSpec((None, tq, 1, heads, hd), lambda n, qi, ki: (n, qi, 0, 0, 0))
        k_spec = pl.BlockSpec((None, tk, 1, heads, hd), lambda n, qi, ki: (n, ki, 1, 0, 0))
        v_spec = pl.BlockSpec((None, tk, 1, heads, hd), lambda n, qi, ki: (n, ki, 2, 0, 0))
        qkv_args = (qkv5, qkv5, qkv5)
    else:
        q_spec = pl.BlockSpec((None, tq, heads, hd), lambda n, qi, ki: (n, qi, 0, 0))
        k_spec = pl.BlockSpec((None, tk, heads, hd), lambda n, qi, ki: (n, ki, 0, 0))
        v_spec = pl.BlockSpec((None, tk, heads, hd), lambda n, qi, ki: (n, ki, 0, 0))
        qkv_args = (Qh, Kh, Vh)

    in_specs = [q_spec, k_spec, v_spec]
    args = list(qkv_args)
    if use_mask:
        in_specs.append(pl.BlockSpec((tq, tk), lambda n, qi, ki: (qi, ki)))
        args.append(bias2d)

    ctx = pl.pallas_call(
        partial(_attention_kernel, heads=heads, head_dim=hd, use_mask=use_mask),
        out_shape=jax.ShapeDtypeStruct((N, Sq, E), cd),
        grid=grid,
        in_specs=in_specs,
        out_specs=pl.BlockSpec((None, tq, E), lambda n, qi, ki: (n, qi, 0)),
        scratch_shapes=[
            pltpu.VMEM((heads, tq, hd), cd),           # head-major Q tile (built once / q-tile)
            pltpu.VMEM((heads, tq, 1), jnp.float32),   # running max
            pltpu.VMEM((heads, tq, 1), jnp.float32),   # running denominator
            pltpu.VMEM((heads, tq, hd), jnp.float32),  # running numerator
        ],
        compiler_params=pltpu.CompilerParams(
            dimension_semantics=("parallel", "parallel", "arbitrary"),
            vmem_limit_bytes=_vmem_limit_bytes()),
    )(*args)

    # attention output is already (N, Sq, E) head-merged -> single output GEMM
    out = _linear(ctx.reshape(N * Sq, E), wo_t, bo2, jnp.float32).reshape(N, Sq, E)
    return out


# ---------------------------------------------------------------------------
# Pure-JAX replica of the PyTorch forward (correctness reference)
# ---------------------------------------------------------------------------
def _reference(values, keys, queries, mask, params, heads):
    N, Sq, E = queries.shape
    hd = E // heads
    (Wq, bq), (Wk, bk), (Wv, bv), (Wo, bo) = params
    Q = queries @ Wq.T + bq
    K = keys @ Wk.T + bk
    V = values @ Wv.T + bv
    Q = Q.reshape(N, Sq, heads, hd)
    K = K.reshape(N, keys.shape[1], heads, hd)
    V = V.reshape(N, values.shape[1], heads, hd)
    att = jnp.einsum('nqhd,nkhd->nhqk', Q, K)
    if mask is not None:
        att = jnp.where(mask == 0, jnp.float32(-1e20), att)
    att = jax.nn.softmax(att / math.sqrt(E), axis=3)
    out = jnp.einsum('nhql,nlhd->nqhd', att, V).reshape(N, Sq, E)
    return out @ Wo.T + bo


if __name__ == "__main__":
    N, S, E, H = 2, 8, 32, 4

    key = jax.random.PRNGKey(0)
    ks = jax.random.split(key, 12)

    def linear_params(kw, kb, out_f, in_f):
        bound = 1.0 / math.sqrt(in_f)
        W = jax.random.uniform(kw, (out_f, in_f), jnp.float32, -bound, bound)
        b = jax.random.uniform(kb, (out_f,), jnp.float32, -bound, bound)
        return W, b

    params = (
        linear_params(ks[0], ks[1], E, E),   # toQueries
        linear_params(ks[2], ks[3], E, E),   # toKeys
        linear_params(ks[4], ks[5], E, E),   # toValues
        linear_params(ks[6], ks[7], E, E),   # finalLinear
    )

    queries = jax.random.normal(ks[8], (N, S, E), jnp.float32)
    keys_in = jax.random.normal(ks[9], (N, S, E), jnp.float32)
    values_in = jax.random.normal(ks[10], (N, S, E), jnp.float32)
    x_shared = jax.random.normal(ks[11], (N, S, E), jnp.float32)

    # causal (lower-triangular) mask, broadcast over batch and heads
    mask = jnp.tril(jnp.ones((S, S), jnp.float32)).reshape(1, 1, S, S)

    # 1) distinct q/k/v (general path), f32 compute
    ref = _reference(values_in, keys_in, queries, mask, params, H)
    out = jax.block_until_ready(
        self_attention(values_in, keys_in, queries, mask, params, H,
                       compute_dtype=jnp.float32))
    assert out.shape == (N, S, E)
    assert jnp.allclose(out, ref, atol=1e-2, rtol=1e-2), \
        f"f32 max abs err {jnp.max(jnp.abs(out - ref))}"

    # 2) true self-attention (same tensor) -> fused QKV projection path
    ref_s = _reference(x_shared, x_shared, x_shared, mask, params, H)
    out_s = jax.block_until_ready(
        self_attention(x_shared, x_shared, x_shared, mask, params, H,
                       compute_dtype=jnp.float32))
    assert jnp.allclose(out_s, ref_s, atol=1e-2, rtol=1e-2), \
        f"fused-QKV max abs err {jnp.max(jnp.abs(out_s - ref_s))}"

    # 3) bf16 MXU path (f32 accumulation, f32 softmax statistics)
    out_bf = jax.block_until_ready(
        self_attention(x_shared, x_shared, x_shared, mask, params, H,
                       compute_dtype=jnp.bfloat16))
    assert jnp.allclose(out_bf, ref_s, atol=1e-1, rtol=1e-1), \
        f"bf16 max abs err {jnp.max(jnp.abs(out_bf - ref_s))}"

    # 4) mask=None path
    ref_nm = _reference(values_in, keys_in, queries, None, params, H)
    out_nm = jax.block_until_ready(
        self_attention(values_in, keys_in, queries, None, params, H,
                       compute_dtype=jnp.float32))
    assert jnp.allclose(out_nm, ref_nm, atol=1e-2, rtol=1e-2), \
        f"no-mask max abs err {jnp.max(jnp.abs(out_nm - ref_nm))}"

    print("KERNEL_OK")
</pallas_src>

<mosaic_0001>
module attributes {stable_mosaic.version = 11 : i64} {
  func.func @_linear_kernel(%arg0: i32, %arg1: i32, %arg2: i32, %arg3: memref<16x32xf32, #tpu.memory_space<vmem>>, %arg4: memref<32x32xf32, #tpu.memory_space<vmem>>, %arg5: memref<1x32xf32, #tpu.memory_space<vmem>>, %arg6: memref<16x32xf32, #tpu.memory_space<vmem>>, %arg7: memref<16x32xf32, #tpu.memory_space<vmem>>) attributes {dimension_semantics = [#tpu.dimension_semantics<parallel>, #tpu.dimension_semantics<parallel>, #tpu.dimension_semantics<arbitrary>], iteration_bounds = array<i64: 1, 1, 1>, scalar_prefetch = 0 : i64, scratch_operands = 1 : i64, tpu.core_type = #tpu.core_type<tc>, window_params = [{transform_indices = @transform_0, window_bounds = array<i64: 16, 32>}, {transform_indices = @transform_1, window_bounds = array<i64: 32, 32>}, {transform_indices = @transform_2, window_bounds = array<i64: 1, 32>}, {transform_indices = @transform_3, window_bounds = array<i64: 16, 32>}]} {
    %c0_i32 = arith.constant 0 : i32
    %0 = arith.cmpi eq, %arg2, %c0_i32 : i32
    %1 = arith.extui %0 : i1 to i32
    %c0_i32_0 = arith.constant 0 : i32
    %2 = arith.cmpi ne, %1, %c0_i32_0 : i32
    scf.if %2 {
      %cst_10 = arith.constant 0.000000e+00 : f32
      %12 = vector.broadcast %cst_10 : f32 to vector<16x32xf32>
      %c0_11 = arith.constant 0 : index
      %c0_12 = arith.constant 0 : index
      %13 = vector.load %arg7[%c0_11, %c0_12] : memref<16x32xf32, #tpu.memory_space<vmem>>, vector<16x32xf32>
      tpu.vector_store %arg7[%c0_11, %c0_12], %12 {strides = array<i32>} : memref<16x32xf32, #tpu.memory_space<vmem>>, vector<16x32xf32>,
    } else {
    }
    %c0 = arith.constant 0 : index
    %c0_1 = arith.constant 0 : index
    %3 = vector.load %arg7[%c0, %c0_1] : memref<16x32xf32, #tpu.memory_space<vmem>>, vector<16x32xf32>
    %c0_2 = arith.constant 0 : index
    %c0_3 = arith.constant 0 : index
    %4 = vector.load %arg3[%c0_2, %c0_3] : memref<16x32xf32, #tpu.memory_space<vmem>>, vector<16x32xf32>
    %c0_4 = arith.constant 0 : index
    %c0_5 = arith.constant 0 : index
    %5 = vector.load %arg4[%c0_4, %c0_5] : memref<32x32xf32, #tpu.memory_space<vmem>>, vector<32x32xf32>
    %cst = arith.constant dense<0.000000e+00> : vector<16x32xf32>
    %6 = tpu.matmul %4, %5, %cst {dimension_numbers = #tpu.dot_dimension_numbers<[1], [0], [0], [1], [0, 0, 1, 1], [], []>} : vector<16x32xf32>, vector<32x32xf32>, vector<16x32xf32> -> vector<16x32xf32>
    %7 = arith.addf %3, %6 : vector<16x32xf32>
    %c0_6 = arith.constant 0 : index
    %c0_7 = arith.constant 0 : index
    %8 = vector.load %arg7[%c0_6, %c0_7] : memref<16x32xf32, #tpu.memory_space<vmem>>, vector<16x32xf32>
    tpu.vector_store %arg7[%c0_6, %c0_7], %7 {strides = array<i32>} : memref<16x32xf32, #tpu.memory_space<vmem>>, vector<16x32xf32>,
    %c0_i32_8 = arith.constant 0 : i32
    %9 = arith.cmpi eq, %arg2, %c0_i32_8 : i32
    %10 = arith.extui %9 : i1 to i32
    %c0_i32_9 = arith.constant 0 : i32
    %11 = arith.cmpi ne, %10, %c0_i32_9 : i32
    scf.if %11 {
      %c0_10 = arith.constant 0 : index
      %c0_11 = arith.constant 0 : index
      %12 = vector.load %arg7[%c0_10, %c0_11] : memref<16x32xf32, #tpu.memory_space<vmem>>, vector<16x32xf32>
      %c0_12 = arith.constant 0 : index
      %c0_13 = arith.constant 0 : index
      %13 = vector.load %arg5[%c0_12, %c0_13] : memref<1x32xf32, #tpu.memory_space<vmem>>, vector<1x32xf32>
      %14 = vector.broadcast %13 : vector<1x32xf32> to vector<16x32xf32>
      %15 = arith.addf %12, %14 : vector<16x32xf32>
      %c0_14 = arith.constant 0 : index
      %c0_15 = arith.constant 0 : index
      %16 = vector.load %arg6[%c0_14, %c0_15] : memref<16x32xf32, #tpu.memory_space<vmem>>, vector<16x32xf32>
      tpu.vector_store %arg6[%c0_14, %c0_15], %15 {strides = array<i32>} : memref<16x32xf32, #tpu.memory_space<vmem>>, vector<16x32xf32>,
    } else {
    }
    return
  }
  func.func @transform_0(%arg0: i32, %arg1: i32, %arg2: i32) -> (i32, i32) {
    %c0_i32 = arith.constant 0 : i32
    return %arg0, %arg2 : i32, i32
  }
  func.func @transform_1(%arg0: i32, %arg1: i32, %arg2: i32) -> (i32, i32) {
    %c0_i32 = arith.constant 0 : i32
    return %arg2, %arg1 : i32, i32
  }
  func.func @transform_2(%arg0: i32, %arg1: i32, %arg2: i32) -> (i32, i32) {
    %c0_i32 = arith.constant 0 : i32
    %c0_i32_0 = arith.constant 0 : i32
    return %c0_i32, %arg1 : i32, i32
  }
  func.func @transform_3(%arg0: i32, %arg1: i32, %arg2: i32) -> (i32, i32) {
    %c0_i32 = arith.constant 0 : i32
    return %arg0, %arg1 : i32, i32
  }
}

</mosaic_0001>

<bundles_post_ra>
// kernel: tpu_custom_call.1
= control target key start
LH: loop header
LB: loop body
LE: loop exit
PB: predicated region body
PF: predicated region fallthrough
CT: control target
= control target key end

     0   :  { %8 = vsyncpa [#allocation4], 0  ;;  %s325_s0 = inlined_call_operand.hbm [shape: f32[16,32], index: 0, kind: input, shape index: {}]   ;;  %s326_s1 = inlined_call_operand.hbm [shape: f32[32,32], index: 1, kind: input, shape index: {}]   ;;  %s327_s2 = inlined_call_operand.vmem [shape: f32[1,32], index: 2, kind: input, shape index: {}]   ;;  %s328_s3 = inlined_call_operand.hbm [shape: f32[16,32], index: 3, kind: output, shape index: {}]  }
   0x1   :  { %9 = vsyncpa [#allocation7], 0 }
   0x2   :  { %10 = vsyncpa [#allocation5], 0  ;;  %s270_s12 = smov [#allocation3]  }
   0x3   :  { %s16_s13 = sshll.u32 %s270_s12, 4  ;;  %s17_s13 = int_to_ptr.vmem [resolvable:$true] %s16_s13 }
   0x4   :  { %s212_s14 = scalar_lea.vmem %s17_s13, 256  ;;  %p217_p1 = scmp.lt.s32.totalorder %s17_s13, %s17_s13 }
   0x5   :  { %p213_p0 = scmp.ne.s32.totalorder %s17_s13, %s212_s14  ;;  %p218_p2 = scmp.lt.s32.totalorder %s212_s14, %s212_s14 }
   0x7   :  { %p219_p3 = por %p218_p2, %p217_p1 }
   0x9   :  { %p220_p4 = pnand %p219_p3, %p213_p0 }
   0xb   :  { %223 = shalt.err (!%p220_p4)
}
   0xc   :  { %s271_s15 = smov 128   ;;  %s272_s16 = smov 8  }
   0xd   :  { %22 = dma.hbm_to_vmem [thread:$0]  %s325_s0, 256, %s17_s13, [#allocation4], %s271_s15, %s271_s15, %s272_s16  }
   0xe   :  { %s273_s19 = smov [#allocation6]  }
   0xf   :  { %s28_s20 = sshll.u32 %s273_s19, 4  ;;  %s29_s20 = int_to_ptr.vmem [resolvable:$true] %s28_s20 }
  0x10   :  { %s232_s21 = scalar_lea.vmem %s29_s20, 512  ;;  %p237_p6 = scmp.lt.s32.totalorder %s29_s20, %s29_s20 }
  0x11   :  { %p233_p5 = scmp.ne.s32.totalorder %s29_s20, %s232_s21  ;;  %p238_p7 = scmp.lt.s32.totalorder %s232_s21, %s232_s21 }
  0x13   :  { %p239_p8 = por %p238_p7, %p237_p6 }
  0x15   :  { %p240_p9 = pnand %p239_p8, %p233_p5 }
  0x17   :  { %243 = shalt.err (!%p240_p9)
}
  0x18   :  { %34 = dma.hbm_to_vmem [thread:$0]  %s326_s1, 512, %s29_s20, [#allocation7], %s271_s15, %s271_s15, %s272_s16  }
  0x19   :  { %264 = dma.done.wait [#allocation4], 256  }
  0x1a   :  { %265 = vsyncadd [#allocation4], 4294967040 }
  0x1b   :  { %266 = dma.done.wait [#allocation7], 512  }
  0x1c   :  { %267 = vsyncadd [#allocation7], 4294966784  ;;  %vm47_vm0 = vcmask 261120   ;;  %v274_v0 = vmov 0.0   ;;  %v57_v1 = vld [vmem:[#allocation6 + $0x18] sm:$0xff]  ;;  %v56_v2 = vld [vmem:[#allocation6 + $0x10] sm:$0xff] }
  0x1d   :  { %49 = vst.msk [vmem:[#allocation2 + $0x8] sm:$0xff] %vm47_vm0, %v274_v0  ;;  %48 = vst.msk [vmem:[#allocation2] sm:$0xff] %vm47_vm0, %v274_v0  ;;  %187 = vmatprep.subr.mxu0 %v57_v1  ;;  %v52_v3 = vld [vmem:[#allocation3] sm:$0xff]  ;;  %v55_v4 = vld [vmem:[#allocation6 + $0x8] sm:$0xff]  ;;  %s275_s24 = smov [#allocation8]  }
  0x1e   :  { %188 = vmatpush3.msra.mxu0 %v57_v1  ;;  %195 = vmatprep.mubr.msk.f32.mxu0 %vm47_vm0, %v52_v3  ;;  %v54_v5 = vld [vmem:[#allocation6] sm:$0xff]  ;;  %v53_v6 = vld [vmem:[#allocation3 + $0x8] sm:$0xff]  ;;  %s165_s25 = sshll.u32 %s275_s24, 4  ;;  %s166_s25 = int_to_ptr.vmem [resolvable:$true] %s165_s25 }
  0x1f   :  { %189 = vmatprep.subr.mxu0 %v56_v2  ;;  %v180_v13 = vld [vmem:[%s327_s2] ss:$0 sm:$0xff]  ;;  %s244_s26 = scalar_lea.vmem %s166_s25, 256  ;;  %p249_p11 = scmp.lt.s32.totalorder %s166_s25, %s166_s25 }
  0x20   :  { %190 = vmatpush3.msra.mxu0 %v56_v2  ;;  %p245_p10 = scmp.ne.s32.totalorder %s166_s25, %s244_s26  ;;  %p250_p12 = scmp.lt.s32.totalorder %s244_s26, %s244_s26 }
  0x21   :  { %191 = vmatprep.subr.mxu0 %v55_v4 }
  0x22   :  { %192 = vmatpush3.msra.mxu0 %v55_v4  ;;  %p251_p13 = por %p250_p12, %p249_p11 }
  0x23   :  { %193 = vmatprep.subr.mxu0 %v54_v5 }
  0x24   :  { %194 = vmatpush3.msra.mxu0 %v54_v5  ;;  %v51_v7 = vld [vmem:[#allocation2 + $0x8] sm:$0xff]  ;;  %v50_v9 = vld [vmem:[#allocation2] sm:$0xff]  ;;  %p252_p0 = pnand %p251_p13, %p245_p10 }
  0x25   :  { %196 = vmatmul.mubr.msk.f32.vlgmr.msra.gmra.mxu0 %vm47_vm0, %v53_v6 }
  0xe5   :  { %v197_v8 = vpop.f32.mrf.mxu0 }
  0xe6   :  { %v141_v10 = vadd.f32 %v197_v8, %v51_v7 }
  0xe7   :  { %v131_v11 = vpop.f32.mrf.mxu0 }
  0xe8   :  { %143 = vst.msk [vmem:[#allocation2 + $0x8] sm:$0xff] %vm47_vm0, %v141_v10  ;;  %v140_v12 = vadd.f32 %v131_v11, %v50_v9 }
  0xea   :  { %142 = vst.msk [vmem:[#allocation2] sm:$0xff] %vm47_vm0, %v140_v12 }
  0xef   :  { %v148_v14 = vld [vmem:[#allocation2 + $0x8] sm:$0xff] }
  0xf0   :  { %v157_v15 = vadd.f32 %v180_v13, %v148_v14 }
  0xf1   :  { %v147_v16 = vld [vmem:[#allocation2] sm:$0xff] }
  0xf2   :  { %v156_v17 = vadd.f32 %v180_v13, %v147_v16  ;;  %159 = vst.msk [vmem:[#allocation8 + $0x8] sm:$0xff] %vm47_vm0, %v157_v15 }
  0xf4   :  { %158 = vst.msk [vmem:[#allocation8] sm:$0xff] %vm47_vm0, %v156_v17 }
  0xf5   :  { %255 = shalt.err (!%p252_p0)
}
  0xf6   :  { %171 = dma.vmem_to_hbm [thread:$0]  %s166_s25, 256, %s328_s3, [#allocation5], %s271_s15, %s271_s15, %s272_s16  }
  0xf7   :  { %268 = dma.done.wait [#allocation5], 256  }
  0xf8   :  { %269 = vsyncadd [#allocation5], 4294967040 }
  0xf9   :  { %175 = vsyncpa [#allocation4], 1 }
  0xfa   :  { %176 = vsyncpa [#allocation7], 1 }
  0xfb   :  { %177 = vsyncpa [#allocation5], 1 }

</bundles_post_ra>
